<compile_context>
chip_gen: v6e
topology: v6e:2x2x1
jax: 0.10.0
libtpu: 0.0.40
codegen_flags: <defaults>
</compile_context>

<pallas_src>
import functools

import jax
import jax.numpy as jnp
from jax.experimental import pallas as pl
from jax.experimental.pallas import tpu as pltpu

_LANE = 128
_MIB = 1024 * 1024


def _normalize_kernel(x_ref, o_ref, *, power):
    """One (TILE_N, D) tile: L-p normalize each row along the last (lane) axis."""
    xf = x_ref[...].astype(jnp.float32)                  # f32 accumulation & scaling
    if power == 2:
        s = jnp.sum(xf * xf, axis=-1, keepdims=True)     # VALU mul + XLU lane reduce
        inv = jax.lax.rsqrt(s)                           # EUP slot (free under DMA bound)
    else:
        s = jnp.sum(xf ** power, axis=-1, keepdims=True)
        inv = s ** (-1.0 / power)
    # Scale in f32, cast the product once (removes an extra rounding and the
    # bf16 pack/unpack promotion on v5e's f32-only VPU).
    o_ref[...] = (xf * inv).astype(o_ref.dtype)


def _sublane_multiple(dtype) -> int:
    # Sub-32-bit dtypes pack along sublanes: 8 rows/vreg (4B), 16 (2B), 32 (1B).
    itemsize = jnp.dtype(dtype).itemsize
    return max(8, 8 * (4 // max(itemsize, 1)))


def _vmem_capacity_bytes() -> int:
    """Per-TensorCore VMEM capacity; conservative 64 MiB (v7x) fallback."""
    try:
        info = pltpu.get_tpu_info()
        cap = int(getattr(info, "vmem_capacity_bytes", 0))
        if cap > 0:
            return cap
    except Exception:
        pass
    return 64 * _MIB


def _pick_tile_n(n, d, dtype, target_block_bytes, num_core_hint=2):
    """Largest sublane-aligned row tile s.t. (a) the double-buffered in+out
    footprint stays near 4 * target_block_bytes and (b) the grid keeps >= ~4
    steps per TensorCore (megacore sharding + pipeline overlap have work)."""
    sub = _sublane_multiple(dtype)
    row_bytes = d * jnp.dtype(dtype).itemsize
    tile = max(sub, target_block_bytes // max(row_bytes, 1))
    tile = max(sub, (tile // sub) * sub)                 # round down to sublane multiple
    n_ceil = ((n + sub - 1) // sub) * sub
    step_cap = max(sub, ((n_ceil // (4 * num_core_hint)) // sub) * sub)
    return max(sub, min(tile, step_cap, n_ceil))


def normalize(x, power=2, tile_n=None):
    """L-p normalize along dim 1 of a (N, D) array, matching Normalize.forward()."""
    n, d = x.shape
    orig_dtype = x.dtype

    # Lane-dense store path: pad D to a multiple of 128 with zeros (zeros leave
    # sum(x**p) unchanged for p > 0), slice the pad off after the kernel.
    # TODO(synk): for very small D, packing several rows per 128-lane row would
    # beat padding; not needed for the embedding widths this module targets.
    d_pad = _LANE * pl.cdiv(d, _LANE)
    xp = x if d_pad == d else jnp.pad(x, ((0, 0), (0, d_pad - d)))

    vmem_cap = _vmem_capacity_bytes()
    # Bigger blocks on v7x (~3.2 TB/s HBM/TC, 64 MiB VMEM) to amortize the
    # ~0.35us fixed per-grid-step cost; 8 MiB already >=~95% roofline on v5e/v6e.
    target_block_bytes = 12 * _MIB if vmem_cap <= 64 * _MIB else 8 * _MIB
    if tile_n is None:
        tile_n = _pick_tile_n(n, d_pad, x.dtype, target_block_bytes)

    itemsize = jnp.dtype(x.dtype).itemsize
    block_bytes = tile_n * d_pad * itemsize
    # 2 pipeline buffers each for input and output + internal scratch headroom,
    # derived from the ACTUAL block size (huge D stays safe), clamped to ~7/8
    # of the physical per-core VMEM (56 MiB on v7x, 112 MiB on v5e/v6e).
    vmem_limit = int(min(max(4 * block_bytes + 4 * _MIB, 32 * _MIB),
                         (vmem_cap * 7) // 8))

    kernel = functools.partial(_normalize_kernel, power=power)
    out = pl.pallas_call(
        kernel,
        out_shape=jax.ShapeDtypeStruct((n, d_pad), orig_dtype),
        grid_spec=pltpu.PrefetchScalarGridSpec(
            num_scalar_prefetch=0,
            grid=(pl.cdiv(n, tile_n),),                  # partial tail block handled by Pallas
            in_specs=[pl.BlockSpec((tile_n, d_pad), lambda i: (i, 0))],
            out_specs=pl.BlockSpec((tile_n, d_pad), lambda i: (i, 0)),
        ),
        compiler_params=pltpu.CompilerParams(
            dimension_semantics=("parallel",),           # v7x: shard row blocks across 2 TCs
            vmem_limit_bytes=vmem_limit,
        ),
    )(xp)
    return out if d_pad == d else out[:, :d]


def _reference(x, power=2):
    norm = jnp.sum(x ** power, axis=1, keepdims=True) ** (1.0 / power)
    return x / norm


if __name__ == "__main__":
    key = jax.random.PRNGKey(0)
    k1, k2, k3 = jax.random.split(key, 3)

    # Primary small case consistent with the module: (batch, feature) embeddings.
    x1 = jax.random.normal(k1, (16, 128), dtype=jnp.float32)
    o1 = jax.block_until_ready(normalize(x1, power=2))
    assert o1.shape == x1.shape and o1.dtype == x1.dtype
    assert jnp.allclose(o1, _reference(x1), atol=1e-5, rtol=1e-5)

    # Ragged rows + non-multiple-of-128 feature dim -> exercises the cdiv tail
    # block and the zero-pad lane-dense store path.
    x2 = jax.random.normal(k2, (100, 200), dtype=jnp.float32)
    o2 = jax.block_until_ready(normalize(x2, power=2))
    assert o2.shape == x2.shape and o2.dtype == x2.dtype
    assert jnp.allclose(o2, _reference(x2), atol=1e-5, rtol=1e-5)

    # bf16 input: kernel accumulates and scales in f32, casts the product once.
    x3 = jax.random.normal(k3, (24, 128), dtype=jnp.bfloat16)
    o3 = jax.block_until_ready(normalize(x3, power=2))
    ref3 = _reference(x3.astype(jnp.float32)).astype(jnp.bfloat16)
    assert o3.shape == x3.shape and o3.dtype == x3.dtype
    assert jnp.allclose(o3.astype(jnp.float32), ref3.astype(jnp.float32),
                        atol=2e-2, rtol=2e-2)

    print("KERNEL_OK")
</pallas_src>

<mosaic_0001>
module attributes {stable_mosaic.version = 11 : i64} {
  func.func @_normalize_kernel(%arg0: i32, %arg1: memref<8x128xf32, #tpu.memory_space<vmem>>, %arg2: memref<8x128xf32, #tpu.memory_space<vmem>>) attributes {dimension_semantics = [#tpu.dimension_semantics<parallel>], iteration_bounds = array<i64: 2>, scalar_prefetch = 0 : i64, scratch_operands = 0 : i64, tpu.core_type = #tpu.core_type<tc>, window_params = [{transform_indices = @transform_0, window_bounds = array<i64: 8, 128>}, {transform_indices = @transform_1, window_bounds = array<i64: 8, 128>}]} {
    %c0 = arith.constant 0 : index
    %c0_0 = arith.constant 0 : index
    %0 = vector.load %arg1[%c0, %c0_0] : memref<8x128xf32, #tpu.memory_space<vmem>>, vector<8x128xf32>
    %1 = arith.mulf %0, %0 : vector<8x128xf32>
    %cst = arith.constant dense<0.000000e+00> : vector<8xf32>
    %2 = vector.multi_reduction <add>, %1, %cst [1] : vector<8x128xf32> to vector<8xf32>
    %3 = vector.shape_cast %2 : vector<8xf32> to vector<8x1xf32>
    %4 = math.rsqrt %3 : vector<8x1xf32>
    %5 = vector.broadcast %4 : vector<8x1xf32> to vector<8x128xf32>
    %6 = arith.mulf %0, %5 : vector<8x128xf32>
    %c0_1 = arith.constant 0 : index
    %c0_2 = arith.constant 0 : index
    %7 = vector.load %arg2[%c0_1, %c0_2] : memref<8x128xf32, #tpu.memory_space<vmem>>, vector<8x128xf32>
    tpu.vector_store %arg2[%c0_1, %c0_2], %6 {strides = array<i32>} : memref<8x128xf32, #tpu.memory_space<vmem>>, vector<8x128xf32>,
    return
  }
  func.func @transform_0(%arg0: i32) -> (i32, i32) {
    %c0_i32 = arith.constant 0 : i32
    %c0_i32_0 = arith.constant 0 : i32
    return %arg0, %c0_i32 : i32, i32
  }
  func.func @transform_1(%arg0: i32) -> (i32, i32) {
    %c0_i32 = arith.constant 0 : i32
    %c0_i32_0 = arith.constant 0 : i32
    return %arg0, %c0_i32 : i32, i32
  }
}

</mosaic_0001>

<bundles_post_ra>
// kernel: tpu_custom_call.1
= control target key start
LH: loop header
LB: loop body
LE: loop exit
PB: predicated region body
PF: predicated region fallthrough
CT: control target
= control target key end

     0   :  { %6 = vsyncpa [#allocation3], 0  ;;  %s530_s0 = inlined_call_operand.hbm [shape: f32[16,128], index: 0, kind: input, shape index: {}]   ;;  %s531_s1 = inlined_call_operand.hbm [shape: f32[16,128], index: 1, kind: output, shape index: {}]  }
   0x1   :  { %8 = vsyncpa [#allocation3 + $0x1], 0 }
   0x2   :  { %9 = vsyncpa [#allocation4], 0 }
   0x3   :  { %11 = vsyncpa [#allocation4 + $0x1], 0  ;;  %s389_s6 = smov 0   ;;  %s391_s7 = smov 0  }
   0x4   :  { %s393_s8 = smov 0   ;;  %s395_s9 = smov 0  }
   0x5 LB: > { %s410_s10 = sadd.s32 4294967295, %s375_s9   ;;  %s223_s11 = sadd.s32 4294967294, %s375_s9   ;;  %s375_s9 = sphi %s395_s9, %s548_s9   ;;  %s371_s8 = sphi %s393_s8, %s547_s8   ;;  %s367_s7 = sphi %s391_s7, %s546_s7   ;;  %s363_s6 = sphi %s389_s6, %s545_s6  }
   0x6   : > { %s414_s12 = sadd.s32 1, %s375_s9   ;;  %s24_s13 = sadd.s32 1, %s371_s8 }
   0x7   : > { %s21_s14 = ssub.s32 %s375_s9, %s414_s12  ;;  %p31_p0 = scmp.ne.s32.totalorder %s371_s8, %s367_s7 }
   0x8   : > { %p22_p1 = scmp.eq.s32.totalorder %s21_s14, 0  ;;  %p32_p2 = scmp.eq.s32.totalorder %s375_s9, 0 }
   0x9   : > { %p37_p3 = scmp.ne.s32.totalorder %s367_s7, %s363_s6  ;;  %p38_p4 = scmp.eq.s32.totalorder %s410_s10, 0 }
   0xa   : > { %s426_s15 = scalar_select %p22_p1, %s371_s8, %s24_s13  }
   0xb   : > { %p428_p5 = por %p32_p2, %p31_p0  ;;  %p432_p6 = por %p38_p4, %p37_p3 }
   0xc   : > { %p61_p7 = scmp.eq.s32.totalorder %s410_s10, 1  ;;  %p67_p8 = scmp.eq.s32.totalorder %s223_s11, 1 }
   0xd   : > { %s535_s17 = scalar_select %p432_p6, 1, 0 }
   0xe   : > { %p247_p10 = scmp.lt.s32.totalorder %s375_s9, 2  ;;  %p439_p11 = por %p61_p7, %p31_p0 }
   0xf   : > { %p443_p12 = por %p67_p8, %p37_p3  ;;  %s87_s20 = sand.u32 1, %s371_s8  }
  0x10   : > { %s536_s18 = scalar_select %p439_p11, 1, 0 }
  0x11   : > { %s537_s19 = scalar_select %p443_p12, 1, 0 }
  0x12   : > { %s227_s21 = sshll.u32 %s375_s9, 7  ;;  %s226_s22 = sshll.u32 %s87_s20, 3 }
  0x13   : > { %s452_s25 = scalar_lea.hbm %s530_s0, %s227_s21  ;;  %s91_s26 = scalar_lea.vmem [#allocation2], %s226_s22 }
  0x14   : > { %s98_s27 = sshll.u32 %s91_s26, 4  ;;  %p456_p13 = pnand %p247_p10, %p428_p5  ;;  %s460_s27 = int_to_ptr.vmem [resolvable:$true] %s98_s27 }
  0x15   : > { %s88_s29 = scalar_lea.sflag [#allocation3], %s87_s20  ;;  %s283_s30 = scalar_lea.hbm %s452_s25, 128 }
  0x16   : > { %p284_p2 = scmp.ne.s32.totalorder %s452_s25, %s283_s30  ;;  %p285_p3 = pneg %p456_p13 }
  0x17   : > { %s288_s4 = scalar_lea.hbm %s530_s0, 256  ;;  %p289_p5 = scmp.lt.s32.totalorder %s452_s25, %s530_s0 }
  0x18   : > { %p286_p4 = pnand %p285_p3, %p284_p2  ;;  %p290_p8 = scmp.lt.s32.totalorder %s288_s4, %s283_s30 }
  0x1a   : > { %p287_p7 = pneg %p286_p4  ;;  %p291_p10 = por %p290_p8, %p289_p5 }
  0x1c   : > { %p292_p9 = pnand %p291_p10, %p287_p7 }
  0x1e   : > { %295 = shalt.err (!%p292_p9)
}
  0x1f   : > { %s296_s13 = scalar_lea.vmem %s460_s27, 128  ;;  %s377_s14 = smov [#allocation2]  }
  0x20   : > { %p297_p0 = scmp.ne.s32.totalorder %s460_s27, %s296_s13  ;;  %s301_s16 = sshll.u32 %s377_s14, 4  ;;  %s302_s16 = int_to_ptr.vmem [resolvable:$false] %s301_s16 }
  0x21   : > { %s303_s20 = scalar_lea.vmem %s302_s16, 256  ;;  %p304_p4 = scmp.lt.s32.totalorder %s460_s27, %s302_s16 }
  0x22   : > { %p299_p1 = pnand %p297_p0, %p285_p3  ;;  %p305_p12 = scmp.lt.s32.totalorder %s303_s20, %s296_s13 }
  0x24   : > { %p300_p2 = pneg %p299_p1  ;;  %p306_p11 = por %p305_p12, %p304_p4 }
  0x26   : > { %p307_p6 = pnand %p306_p11, %p300_p2 }
  0x28   : > { %310 = shalt.err (!%p307_p6)
}
  0x29   : > { %242 = dma.hbm_to_vmem [thread:$0]  (!%p456_p13), %s452_s25, 128, %s460_s27, %s88_s29  }
  0x2a   : > { %p539_p9 = scmp.lt.s32.totalorder %s375_s9, 3  ;;  %p540_p7 = scmp.ge.s32.totalorder %s375_s9, 1 }
  0x2c   : > { %p104_p0 = pnand %p540_p7, %p539_p9 }
  0x2d   : > { %s487_s21 = sand.u32 (!%p104_p0), 1, %s367_s7   ;;  %p541_p6 = scmp.ne.s32.totalorder (!%p104_p0), %s535_s17, 0 }
  0x2e   : > { %107 = sbr.rel (%p104_p0) target bundleno = 222 (0xde), region = 24  ;;  %s229_s22 = sshll.u32 (!%p104_p0), %s487_s21, 3 }
  0x2f   : > { %s110_s23 = scalar_lea.sflag (!%p104_p0), [#allocation3], %s487_s21  ;;  %s113_s24 = scalar_lea.vmem (!%p104_p0), [#allocation2], %s229_s22 }
  0x33   : > { %354 = dma.done.wait (%p541_p6), %s110_s23, 128  }
  0x34   : > { %356 = vsyncadd (%p541_p6), %s110_s23, 4294967168  ;;  %v132_v0 = vld [vmem:[%s113_s24] sm:$0xff]  ;;  %s232_s25 = sshll.u32 %s410_s10, 7  ;;  %s131_s26 = scalar_lea.vmem [#allocation5], %s229_s22 }
  0x35   : > { %v133_v1 = vmul.f32 %v132_v0, %v132_v0  ;;  %s153_s27 = sshll.u32 %s131_s26, 4  ;;  %s151_s30 = scalar_lea.hbm %s531_s1, %s232_s25  ;;  %s154_s27 = int_to_ptr.vmem [resolvable:$true] %s153_s27 }
  0x36   : > { %s140_s17 = scalar_lea.sflag [#allocation4], %s487_s21  ;;  %s311_s2 = scalar_lea.vmem %s154_s27, 128 }
  0x37   : > { %134 = vadd.xlane.f32.xlu0 %v133_v1  ;;  %p312_p11 = scmp.ne.s32.totalorder %s154_s27, %s311_s2  ;;  %p542_p12 = scmp.ne.s32.totalorder %s536_s18, 0 }
  0x38   : > { %s378_s3 = smov [#allocation5]  }
  0x39   : > { %p313_p13 = pnand %p312_p11, %p542_p12  ;;  %s315_s4 = sshll.u32 %s378_s3, 4  ;;  %s316_s4 = int_to_ptr.vmem [resolvable:$false] %s315_s4 }
  0x3a   : > { %s317_s10 = scalar_lea.vmem %s316_s4, 256  ;;  %p318_p3 = scmp.lt.s32.totalorder %s154_s27, %s316_s4 }
  0x3b   : > { %p314_p1 = pneg %p313_p13  ;;  %p319_p5 = scmp.lt.s32.totalorder %s317_s10, %s311_s2 }
  0x3d   : > { %p320_p8 = por %p319_p5, %p318_p3 }
  0x3f   : > { %p321_p10 = pnand %p320_p8, %p314_p1 }
  0xc0   : > { %v135_v2 = vpop.xlane.xlu0 %134 }
  0xc1   : > { %281 = vrsqrt.f32 %v135_v2 }
  0xce   : > { %v282_v3 = vpop.eup %281 }
  0xcf   : > { %v137_v4 = vmul.f32 %v282_v3, %v132_v0 }
  0xd1   : > { %138 = vst [vmem:[%s131_s26] sm:$0xff] %v137_v4 }
  0xd2   : > { %324 = shalt.err (!%p321_p10)
}
  0xd3   : > { %s325_s5 = scalar_lea.hbm %s151_s30, 128  ;;  %s329_s14 = scalar_lea.hbm %s531_s1, 256 }
  0xd4   : > { %p326_p2 = scmp.ne.s32.totalorder %s151_s30, %s325_s5  ;;  %p330_p7 = scmp.lt.s32.totalorder %s151_s30, %s531_s1 }
  0xd5   : > { %p331_p0 = scmp.lt.s32.totalorder %s329_s14, %s325_s5 }
  0xd6   : > { %p327_p4 = pnand %p326_p2, %p542_p12 }
  0xd7   : > { %p332_p6 = por %p331_p0, %p330_p7 }
  0xd8   : > { %p328_p9 = pneg %p327_p4 }
  0xda   : > { %p333_p11 = pnand %p332_p6, %p328_p9 }
  0xdc   : > { %336 = shalt.err (!%p333_p11)
}
  0xdd   : > { %237 = dma.vmem_to_hbm [thread:$0]  (%p542_p12), %s154_s27, 128, %s151_s30, %s140_s17  }
  0xde PF: > { %s165_s21 = sand.u32 1, %s363_s6   ;;  %p543_p13 = scmp.ne.s32.totalorder %s537_s19, 0 }
  0xdf   : > { %p544_p1 = scmp.ge.s32.totalorder %s375_s9, 2  ;;  %s166_s22 = scalar_lea.sflag [#allocation4], %s165_s21 }
  0xe1   : > { %p244_p3 = pnand %p544_p1, %p543_p13 }
  0xe3   : > { %p245_p5 = pneg %p244_p3 }
  0xe5   : > { %358 = dma.done.wait (%p245_p5), %s166_s22, 128  }
  0xe6   : > { %360 = vsyncadd (%p245_p5), %s166_s22, 4294967168  ;;  %p14_p8 = scmp.ge.s32.totalorder %s414_s12, 4   ;;  %s545_s6 = smov %s367_s7 }
  0xe7   : > { %s546_s7 = smov %s371_s8  ;;  %s547_s8 = smov %s426_s15 }
  0xe8   : > { %s548_s9 = smov %s414_s12  ;;  %16 = sbr.rel (!%p14_p8) target bundleno = 5 (0x5), region = 69 }
  0xed   :  { %171 = vsyncpa [#allocation3], 1 }
  0xee   :  { %173 = vsyncpa [#allocation3 + $0x1], 1 }
  0xef   :  { %174 = vsyncpa [#allocation4], 1 }
  0xf0   :  { %176 = vsyncpa [#allocation4 + $0x1], 1 }

</bundles_post_ra>
